<compile_context>
chip_gen: v7x
topology: tpu7x:2x2x1
jax: 0.10.0
libtpu: 0.0.40
codegen_flags: <defaults>
</compile_context>

<pallas_src>
import functools

import jax
import jax.numpy as jnp
from jax.experimental import pallas as pl
from jax.experimental.pallas import tpu as pltpu

EPS = 1e-5                       # nn.BatchNorm1d default
_VMEM_LIMIT = 32 * 1024 * 1024   # scoped VMEM request; safe on v5e/v6e/v7x
_TILE_BUDGET = 2 * 1024 * 1024   # per-tile bytes (~4x lives in VMEM: in+out, double-buffered)


def _bn3d_kernel(x_ref, w_ref, b_ref, o_ref, *, inv_count):
    # x_ref: (N, TC, L) -- one block of channels, full (N, L) extent.
    # w_ref/b_ref: (1, TC, 1)
    x = x_ref[...].astype(jnp.float32)
    mean = jnp.sum(x, axis=(0, 2), keepdims=True) * inv_count            # (1, TC, 1)
    centered = x - mean
    var = jnp.sum(centered * centered, axis=(0, 2), keepdims=True) * inv_count
    scale = jax.lax.rsqrt(var + EPS) * w_ref[...].astype(jnp.float32)    # (1, TC, 1)
    # Fused per-element pass: y = centered * scale + bias  (2 VPU ops / element).
    o_ref[...] = (centered * scale + b_ref[...].astype(jnp.float32)).astype(o_ref.dtype)


def _bn2d_kernel(x_ref, w_ref, b_ref, o_ref, *, inv_count):
    # x_ref: (N, TCL) -- full batch, one lane-block of channels (C on lanes).
    x = x_ref[...].astype(jnp.float32)
    mean = jnp.sum(x, axis=0, keepdims=True) * inv_count                 # (1, TCL)
    centered = x - mean
    var = jnp.sum(centered * centered, axis=0, keepdims=True) * inv_count
    scale = jax.lax.rsqrt(var + EPS) * w_ref[...].astype(jnp.float32)
    o_ref[...] = (centered * scale + b_ref[...].astype(jnp.float32)).astype(o_ref.dtype)


def _pick_channel_tile(N, C, L, itemsize):
    """Channel-block size TC for (N, TC, L) tiles: a multiple of 8 dividing C
    (or C itself), the largest that fits the per-tile VMEM budget."""
    if C % 8 != 0:
        return C                                    # sublane dim must be %8 or full extent
    cands = [C] + [t for t in (1024, 512, 256, 128, 64, 32, 16, 8) if t < C and C % t == 0]
    for tc in cands:
        if N * tc * L * itemsize <= _TILE_BUDGET:
            return tc
    # Very large N*L per channel would need a two-pass kernel tiled over M = N*L
    # with sum/sumsq accumulators; fall back to the smallest legal block here.
    return 8


def _pick_lane_tile(N, C, itemsize):
    """Channel-lane block size for (N, TCL) tiles of a 2-D (N, C) input."""
    if C % 128 != 0:
        return C                                    # lane dim must be %128 or full extent
    cands = [C] + [t for t in (4096, 2048, 1024, 512, 256, 128) if t < C and C % t == 0]
    for t in cands:
        if N * t * itemsize <= _TILE_BUDGET:
            return t
    return 128


@jax.jit
def batch_norm_1d(x, weight, bias):
    """Training-mode BatchNorm1d forward. x: (N, C) or (N, C, L); weight/bias: (C,)."""
    # TODO(synk): nn.BatchNorm1d also updates running_mean/running_var (momentum,
    # unbiased var) as module state in training mode; only the forward output tensor
    # is produced here.
    itemsize = jnp.dtype(x.dtype).itemsize

    if x.ndim == 3:
        N, C, L = x.shape
        TC = _pick_channel_tile(N, C, L, itemsize)
        w3 = weight.reshape(1, C, 1).astype(jnp.float32)
        b3 = bias.reshape(1, C, 1).astype(jnp.float32)
        kern = functools.partial(_bn3d_kernel, inv_count=1.0 / (N * L))
        return pl.pallas_call(
            kern,
            out_shape=jax.ShapeDtypeStruct((N, C, L), x.dtype),
            grid=(C // TC,),
            in_specs=[
                pl.BlockSpec((N, TC, L), lambda c: (0, c, 0)),
                pl.BlockSpec((1, TC, 1), lambda c: (0, c, 0)),
                pl.BlockSpec((1, TC, 1), lambda c: (0, c, 0)),
            ],
            out_specs=pl.BlockSpec((N, TC, L), lambda c: (0, c, 0)),
            compiler_params=pltpu.CompilerParams(
                dimension_semantics=("parallel",),
                vmem_limit_bytes=_VMEM_LIMIT),
        )(x, w3, b3)

    # 2-D input (N, C): channels already sit on the lane axis -> lane-dense stores
    # with no transpose; reduce over the batch (sublane) axis.
    N, C = x.shape
    TCL = _pick_lane_tile(N, C, itemsize)
    w2 = weight.reshape(1, C).astype(jnp.float32)
    b2 = bias.reshape(1, C).astype(jnp.float32)
    kern = functools.partial(_bn2d_kernel, inv_count=1.0 / N)
    return pl.pallas_call(
        kern,
        out_shape=jax.ShapeDtypeStruct((N, C), x.dtype),
        grid=(C // TCL,),
        in_specs=[
            pl.BlockSpec((N, TCL), lambda c: (0, c)),
            pl.BlockSpec((1, TCL), lambda c: (0, c)),
            pl.BlockSpec((1, TCL), lambda c: (0, c)),
        ],
        out_specs=pl.BlockSpec((N, TCL), lambda c: (0, c)),
        compiler_params=pltpu.CompilerParams(
            dimension_semantics=("parallel",),
            vmem_limit_bytes=_VMEM_LIMIT),
    )(x, w2, b2)


def _reference(x, weight, bias):
    # pure-JAX reference (training-mode batch norm forward)
    x3 = x if x.ndim == 3 else x[:, :, None]
    xf = x3.astype(jnp.float32)
    mean = jnp.mean(xf, axis=(0, 2), keepdims=True)
    var = jnp.mean((xf - mean) ** 2, axis=(0, 2), keepdims=True)
    y = (xf - mean) / jnp.sqrt(var + EPS)
    y = y * weight.reshape(1, -1, 1) + bias.reshape(1, -1, 1)
    y = y.astype(x.dtype)
    return y if x.ndim == 3 else y[:, :, 0]


if __name__ == "__main__":
    key = jax.random.PRNGKey(0)
    k1, k2, k3 = jax.random.split(key, 3)

    # nn.BatchNorm1d(inSize) default init: weight = ones(C), bias = zeros(C)
    N, C, L = 2, 4, 16
    x3 = jax.random.normal(k1, (N, C, L), dtype=jnp.float32)
    weight = jnp.ones((C,), dtype=jnp.float32)
    bias = jnp.zeros((C,), dtype=jnp.float32)

    out3 = batch_norm_1d(x3, weight, bias)
    jax.block_until_ready(out3)
    ref3 = _reference(x3, weight, bias)
    assert out3.shape == x3.shape and out3.dtype == x3.dtype
    assert jnp.allclose(out3, ref3, atol=1e-5, rtol=1e-5)

    # Also exercise the 2-D (N, C) input path with a non-trivial affine.
    x2 = jax.random.normal(k2, (8, C), dtype=jnp.float32)
    w_r = jax.random.normal(k3, (C,), dtype=jnp.float32)
    b_r = jnp.arange(C, dtype=jnp.float32) * 0.1
    out2 = batch_norm_1d(x2, w_r, b_r)
    jax.block_until_ready(out2)
    ref2 = _reference(x2, w_r, b_r)
    assert out2.shape == x2.shape and out2.dtype == x2.dtype
    assert jnp.allclose(out2, ref2, atol=1e-5, rtol=1e-5)

    print("KERNEL_OK")
</pallas_src>

<mosaic_0001>
module attributes {stable_mosaic.version = 11 : i64} {
  func.func @_bn3d_kernel(%arg0: i32, %arg1: memref<2x4x16xf32, #tpu.memory_space<vmem>>, %arg2: memref<1x4x1xf32, #tpu.memory_space<vmem>>, %arg3: memref<1x4x1xf32, #tpu.memory_space<vmem>>, %arg4: memref<2x4x16xf32, #tpu.memory_space<vmem>>) attributes {dimension_semantics = [#tpu.dimension_semantics<parallel>], iteration_bounds = array<i64: 1>, scalar_prefetch = 0 : i64, scratch_operands = 0 : i64, tpu.core_type = #tpu.core_type<tc>, window_params = [{transform_indices = @transform_0, window_bounds = array<i64: 2, 4, 16>}, {transform_indices = @transform_1, window_bounds = array<i64: 1, 4, 1>}, {transform_indices = @transform_2, window_bounds = array<i64: 1, 4, 1>}, {transform_indices = @transform_3, window_bounds = array<i64: 2, 4, 16>}]} {
    %c0 = arith.constant 0 : index
    %c0_0 = arith.constant 0 : index
    %c0_1 = arith.constant 0 : index
    %0 = vector.load %arg1[%c0, %c0_0, %c0_1] : memref<2x4x16xf32, #tpu.memory_space<vmem>>, vector<2x4x16xf32>
    %cst = arith.constant dense<0.000000e+00> : vector<4xf32>
    %1 = vector.multi_reduction <add>, %0, %cst [0, 2] : vector<2x4x16xf32> to vector<4xf32>
    %2 = vector.shape_cast %1 : vector<4xf32> to vector<1x4x1xf32>
    %cst_2 = arith.constant 3.125000e-02 : f32
    %3 = vector.broadcast %cst_2 : f32 to vector<1x4x1xf32>
    %4 = arith.mulf %2, %3 : vector<1x4x1xf32>
    %5 = vector.broadcast %4 : vector<1x4x1xf32> to vector<2x4x16xf32>
    %6 = arith.subf %0, %5 : vector<2x4x16xf32>
    %7 = arith.mulf %6, %6 : vector<2x4x16xf32>
    %cst_3 = arith.constant dense<0.000000e+00> : vector<4xf32>
    %8 = vector.multi_reduction <add>, %7, %cst_3 [0, 2] : vector<2x4x16xf32> to vector<4xf32>
    %9 = vector.shape_cast %8 : vector<4xf32> to vector<1x4x1xf32>
    %cst_4 = arith.constant 3.125000e-02 : f32
    %10 = vector.broadcast %cst_4 : f32 to vector<1x4x1xf32>
    %11 = arith.mulf %9, %10 : vector<1x4x1xf32>
    %cst_5 = arith.constant 9.99999974E-6 : f32
    %12 = vector.broadcast %cst_5 : f32 to vector<1x4x1xf32>
    %13 = arith.addf %11, %12 : vector<1x4x1xf32>
    %14 = math.rsqrt %13 : vector<1x4x1xf32>
    %c0_6 = arith.constant 0 : index
    %c0_7 = arith.constant 0 : index
    %c0_8 = arith.constant 0 : index
    %15 = vector.load %arg2[%c0_6, %c0_7, %c0_8] : memref<1x4x1xf32, #tpu.memory_space<vmem>>, vector<1x4x1xf32>
    %16 = arith.mulf %14, %15 : vector<1x4x1xf32>
    %17 = vector.broadcast %16 : vector<1x4x1xf32> to vector<2x4x16xf32>
    %18 = arith.mulf %6, %17 : vector<2x4x16xf32>
    %c0_9 = arith.constant 0 : index
    %c0_10 = arith.constant 0 : index
    %c0_11 = arith.constant 0 : index
    %19 = vector.load %arg3[%c0_9, %c0_10, %c0_11] : memref<1x4x1xf32, #tpu.memory_space<vmem>>, vector<1x4x1xf32>
    %20 = vector.broadcast %19 : vector<1x4x1xf32> to vector<2x4x16xf32>
    %21 = arith.addf %18, %20 : vector<2x4x16xf32>
    %c0_12 = arith.constant 0 : index
    %c0_13 = arith.constant 0 : index
    %c0_14 = arith.constant 0 : index
    %22 = vector.load %arg4[%c0_12, %c0_13, %c0_14] : memref<2x4x16xf32, #tpu.memory_space<vmem>>, vector<2x4x16xf32>
    tpu.vector_store %arg4[%c0_12, %c0_13, %c0_14], %21 {strides = array<i32>} : memref<2x4x16xf32, #tpu.memory_space<vmem>>, vector<2x4x16xf32>,
    return
  }
  func.func @transform_0(%arg0: i32) -> (i32, i32, i32) {
    %c0_i32 = arith.constant 0 : i32
    %c0_i32_0 = arith.constant 0 : i32
    %c0_i32_1 = arith.constant 0 : i32
    return %c0_i32, %arg0, %c0_i32_0 : i32, i32, i32
  }
  func.func @transform_1(%arg0: i32) -> (i32, i32, i32) {
    %c0_i32 = arith.constant 0 : i32
    %c0_i32_0 = arith.constant 0 : i32
    %c0_i32_1 = arith.constant 0 : i32
    return %c0_i32, %arg0, %c0_i32_0 : i32, i32, i32
  }
  func.func @transform_2(%arg0: i32) -> (i32, i32, i32) {
    %c0_i32 = arith.constant 0 : i32
    %c0_i32_0 = arith.constant 0 : i32
    %c0_i32_1 = arith.constant 0 : i32
    return %c0_i32, %arg0, %c0_i32_0 : i32, i32, i32
  }
  func.func @transform_3(%arg0: i32) -> (i32, i32, i32) {
    %c0_i32 = arith.constant 0 : i32
    %c0_i32_0 = arith.constant 0 : i32
    %c0_i32_1 = arith.constant 0 : i32
    return %c0_i32, %arg0, %c0_i32_0 : i32, i32, i32
  }
}

</mosaic_0001>

<bundles_post_ra>
// kernel: batch_norm_1d.1
= control target key start
LH: loop header
LB: loop body
LE: loop exit
PB: predicated region body
PF: predicated region fallthrough
CT: control target
= control target key end

     0   :  { %vm17_vm0 = vcmask 125952   ;;  %s157_s0 = inlined_call_operand.vmem [shape: f32[2,4,16], index: 0, kind: input, shape index: {}]   ;;  %s158_s1 = inlined_call_operand.vmem [shape: f32[1,4,1], index: 1, kind: input, shape index: {}]   ;;  %s159_s2 = inlined_call_operand.vmem [shape: f32[1,4,1], index: 2, kind: input, shape index: {}]   ;;  %s160_s3 = inlined_call_operand.hbm [shape: f32[2,4,16], index: 3, kind: output, shape index: {}]  }
   0x1   :  { %v15_v0 = vld [vmem:[%s157_s0] sm:$0xf]  ;;  %v16_v1 = vld [vmem:[%s157_s0 + $0x4] sm:$0xf] }
   0x2   :  { %v18_v2 = vsel %vm17_vm0, %v15_v0, 0.0  ;;  %v19_v3 = vsel %vm17_vm0, %v16_v1, 0.0 }
   0x3   :  { %8 = vsyncpa [#allocation3], 0  ;;  %v20_v4 = vadd.f32 %v19_v3, %v18_v2  ;;  %v103_v14 = vmov 0   ;;  %v36_v18 = vld [vmem:[%s158_s1] sm:$0xf]  ;;  %s104_s19 = smov [#allocation2]  }
   0x4   :  { %75 = vset.pattern.permute.xlu1 %v103_v14  ;;  %76 = vset.pattern.permute.xlu0 %v103_v14  ;;  %v45_v21 = vld [vmem:[%s159_s2] sm:$0xf]  ;;  %s60_s20 = sshll.u32 %s104_s19, 4  ;;  %s61_s20 = int_to_ptr.vmem [resolvable:$true] %s60_s20 }
   0x5   :  { %21 = vadd.xlane.f32.xlu0 %v20_v4  ;;  %s79_s1 = scalar_lea.vmem %s61_s20, 128  ;;  %p84_p1 = scmp.lt.s32.totalorder %s61_s20, %s61_s20 }
   0x6   :  { %p80_p0 = scmp.ne.s32.totalorder %s61_s20, %s79_s1  ;;  %p85_p2 = scmp.lt.s32.totalorder %s79_s1, %s79_s1 }
   0x8   :  { %p86_p3 = por %p85_p2, %p84_p1 }
   0xa   :  { %p87_p4 = pnand %p86_p3, %p80_p0 }
  0x92   :  { %v22_v5 = vpop.xlane.xlu0 %21 }
  0x93   :  { %v23_v6 = vmul.f32 0.03125, %v22_v5 }
  0x95   :  { %v24_v7 = vsub.f32 %v15_v0, %v23_v6  ;;  %v25_v8 = vsub.f32 %v16_v1, %v23_v6 }
  0x97   :  { %v26_v9 = vmul.f32 %v24_v7, %v24_v7  ;;  %v27_v10 = vmul.f32 %v25_v8, %v25_v8 }
  0x99   :  { %v28_v11 = vsel %vm17_vm0, %v26_v9, 0.0  ;;  %v29_v12 = vsel %vm17_vm0, %v27_v10, 0.0 }
  0x9a   :  { %v30_v13 = vadd.f32 %v29_v12, %v28_v11 }
  0x9c   :  { %31 = vadd.xlane.f32.xlu0 %v30_v13 }
 0x129   :  { %v32_v15 = vpop.xlane.xlu0 %31 }
 0x12a   :  { %v33_v16 = vmul.f32 0.03125, %v32_v15 }
 0x12c   :  { %v34_v17 = vadd.f32 1e-05, %v33_v16 }
 0x12e   :  { %77 = vrsqrt.f32 %v34_v17 }
 0x138   :  { %v78_v19 = vpop.eup %77 }
 0x139   :  { %v37_v20 = vmul.f32 %v78_v19, %v36_v18 }
 0x13b   :  { %40 = vperm.xlu1 %75, %v37_v20  }
 0x13f   :  { %48 = vperm.xlu1 %75, %v45_v21  }
 0x1ba   :  { %v41_v22 = vpop.permute.xlu1 %40 }
 0x1bb   :  { %v43_v23 = vmul.f32 %v41_v22, %v24_v7  ;;  %v44_v24 = vmul.f32 %v41_v22, %v25_v8 }
 0x1be   :  { %v49_v25 = vpop.permute.xlu1 %48 }
 0x1bf   :  { %v51_v26 = vadd.f32 %v49_v25, %v43_v23  ;;  %v52_v27 = vadd.f32 %v49_v25, %v44_v24 }
 0x1c1   :  { %53 = vst.msk [vmem:[#allocation2] sm:$0xf] %vm17_vm0, %v51_v26  ;;  %54 = vst.msk [vmem:[#allocation2 + $0x4] sm:$0xf] %vm17_vm0, %v52_v27 }
 0x1c2   :  { %90 = shalt.err (!%p87_p4)
}
 0x1c3   :  { %s91_s22 = scalar_lea.hbm %s160_s3, 128 }
 0x1c4   :  { %p92_p5 = scmp.ne.s32.totalorder %s160_s3, %s91_s22  ;;  %p95_p6 = scmp.lt.u32.totalorder %s91_s22, %s160_s3 }
 0x1c6   :  { %p97_p7 = pnand %p95_p6, %p92_p5 }
 0x1c8   :  { %100 = shalt.err (!%p97_p7)
}
 0x1c9   :  { %s105_s27 = smov 64   ;;  %s106_s28 = smov 4  }
 0x1ca   :  { %66 = dma.vmem_to_hbm [thread:$0]  %s61_s20, 128, %s160_s3, [#allocation3], %s105_s27, %s105_s27, %s106_s28  }
 0x1cb   :  { %101 = dma.done.wait [#allocation3], 128  }
 0x1cc   :  { %102 = vsyncadd [#allocation3], 4294967168 }
 0x1cd   :  { %70 = vsyncpa [#allocation3], 1 }

</bundles_post_ra>
